<compile_context>
chip_gen: v7x
topology: tpu7x:2x2x1
jax: 0.10.0
libtpu: 0.0.40
codegen_flags: <defaults>
</compile_context>

<pallas_src>
import math

import jax
import jax.numpy as jnp
from jax.experimental import pallas as pl
from jax.experimental.pallas import tpu as pltpu

# ---------------- model config (small, consistent with the module) ----------------
BATCH = 2
SEQ = 8
D_MODEL = 32
N_HEAD = 4
D_K = D_MODEL // N_HEAD          # 8
BS = BATCH * SEQ                 # 16 flattened (batch, seq) tokens
HBS = N_HEAD * BS                # 64 flattened (head, batch, seq) rows
INV_SQRT_D_K = 1.0 / math.sqrt(D_K)
NEG_INF = -1.0e9


def _heads_to_rows(a2d):
    """(BS, H*D_K) with heads blocked along lanes -> (H*BS, D_K) with heads as sublane blocks."""
    return jnp.concatenate(
        [a2d[:, h * D_K:(h + 1) * D_K] for h in range(N_HEAD)], axis=0)


def _rows_to_heads(af):
    """(H*BS, D_K) -> (BS, H*D_K): inverse relayout of _heads_to_rows."""
    return jnp.concatenate(
        [af[h * BS:(h + 1) * BS, :] for h in range(N_HEAD)], axis=1)


def eda_kernel(x_ref, enc_ref, wq_ref, wkv_ref, wo_ref, bo_ref, mask_ref, out_ref):
    """Single invocation: whole batch, all heads.

    x_ref    : (BS, D)    f32  decoder-side tokens (queries), batch flattened into rows
    enc_ref  : (BS, D)    f32  encoder output (keys / values)
    wq_ref   : (D, D)     bf16 WQ^T with 1/sqrt(d_k) pre-folded, head-ordered columns
    wkv_ref  : (D, 2D)    bf16 [WK^T | WV^T], head-ordered columns inside each half
    wo_ref   : (D, D)     bf16 output_linear.weight^T
    bo_ref   : (1, D)     f32  output_linear bias
    mask_ref : (HBS, HBS) f32  additive mask: 0 where (head, batch) match (and key
                               not padded), -1e9 elsewhere
    out_ref  : (BS, D)
    """
    xb = x_ref[...].astype(jnp.bfloat16)          # (BS, D)
    eb = enc_ref[...].astype(jnp.bfloat16)        # (BS, D)

    # ---- two lane-dense projection matmuls (f32 accumulate).
    q2d = jnp.dot(xb, wq_ref[...], preferred_element_type=jnp.float32)    # (BS, D)
    kv2d = jnp.dot(eb, wkv_ref[...], preferred_element_type=jnp.float32)  # (BS, 2D)

    # ---- relayout heads into row blocks: (BS, H*Dk) -> (H*BS, Dk).
    qf = _heads_to_rows(q2d).astype(jnp.bfloat16)                 # (HBS, Dk)
    kf = _heads_to_rows(kv2d[:, :D_MODEL]).astype(jnp.bfloat16)   # (HBS, Dk)
    vf = _heads_to_rows(kv2d[:, D_MODEL:]).astype(jnp.bfloat16)   # (HBS, Dk)

    # ---- one fused score matmul for all heads & batches; precomputed additive
    # block-diagonal (head x batch) mask keeps them independent (f32 math).
    scores = jnp.einsum("qd,kd->qk", qf, kf,
                        preferred_element_type=jnp.float32)       # (HBS, HBS)
    scores = scores + mask_ref[...]

    # ---- numerically stable softmax, normalization deferred until after the
    # context matmul (smaller tensor); reciprocal rides the EUP slot.
    m = jnp.max(scores, axis=-1, keepdims=True)                   # (HBS, 1)
    e = jnp.exp(scores - m)
    denom = jnp.sum(e, axis=-1, keepdims=True)                    # (HBS, 1)
    # TODO(synk): dropout on attention probabilities is train-mode only; eval forward = identity.
    ctx = jnp.dot(e.astype(jnp.bfloat16), vf,
                  preferred_element_type=jnp.float32)             # (HBS, Dk)
    ctx = ctx * pl.reciprocal(denom, approx=True)

    # ---- back to (BS, H*Dk) and a single lane-dense output projection + bias.
    ctx2d = _rows_to_heads(ctx).astype(jnp.bfloat16)              # (BS, D)
    out = jnp.dot(ctx2d, wo_ref[...],
                  preferred_element_type=jnp.float32) + bo_ref[...]
    out_ref[...] = out.astype(out_ref.dtype)


def encoder_decoder_attention(x, encoder_output, wq, wk, wv, wo, bo, mask=None):
    """x, encoder_output: (B, S, D). wq/wk/wv/wo: (D, D) PyTorch (out, in). bo: (D,).
    mask: optional (B, S) key-padding mask (non-zero = masked), like the module."""
    B, S, D = x.shape
    assert (B, S, D) == (BATCH, SEQ, D_MODEL)

    # ---- all weight re-packing happens outside the kernel (trace time).
    wq_p = (wq.T * INV_SQRT_D_K).astype(jnp.bfloat16)                     # (D, D), scale folded in
    wkv_p = jnp.concatenate([wk.T, wv.T], axis=1).astype(jnp.bfloat16)    # (D, 2D)
    wo_p = wo.T.astype(jnp.bfloat16)                                      # (D, D)
    bo_p = bo.reshape(1, D_MODEL).astype(jnp.float32)

    # ---- precomputed additive mask over the fused (head x batch x seq) axes.
    r = jnp.arange(HBS)
    head = r // BS
    batch = (r % BS) // SEQ
    valid = (head[:, None] == head[None, :]) & (batch[:, None] == batch[None, :])
    add_mask = jnp.where(valid, 0.0, NEG_INF).astype(jnp.float32)         # (HBS, HBS)
    if mask is not None:
        key_pad = jnp.where(mask.reshape(BS) != 0, NEG_INF, 0.0).astype(jnp.float32)
        add_mask = add_mask + jnp.tile(key_pad, (N_HEAD,))[None, :]

    x2 = x.reshape(BS, D)
    e2 = encoder_output.reshape(BS, D)

    vmem = pl.BlockSpec(memory_space=pltpu.MemorySpace.VMEM)
    out = pl.pallas_call(
        eda_kernel,
        out_shape=jax.ShapeDtypeStruct((BS, D), x.dtype),
        in_specs=[vmem] * 7,
        out_specs=vmem,
    )(x2, e2, wq_p, wkv_p, wo_p, bo_p, add_mask)
    return out.reshape(B, S, D)


# ------------------------- pure-JAX reference for sanity -------------------------
def eda_reference(x, enc, wq, wk, wv, wo, bo, mask=None):
    B, S, D = x.shape
    q = (x @ wq.T).reshape(B, S, N_HEAD, D_K).transpose(0, 2, 1, 3)
    k = (enc @ wk.T).reshape(B, S, N_HEAD, D_K).transpose(0, 2, 1, 3)
    v = (enc @ wv.T).reshape(B, S, N_HEAD, D_K).transpose(0, 2, 1, 3)
    scores = jnp.einsum("bhqd,bhkd->bhqk", q, k) / math.sqrt(D_K)
    if mask is not None:
        scores = jnp.where(mask[:, None, None, :] != 0, NEG_INF, scores)
    attn = jax.nn.softmax(scores, axis=-1)
    ctx = jnp.einsum("bhqk,bhkd->bhqd", attn, v)
    ctx = ctx.transpose(0, 2, 1, 3).reshape(B, S, D)
    return ctx @ wo.T + bo


if __name__ == "__main__":
    key = jax.random.PRNGKey(0)
    kx, ke, kq, kk, kv, ko, kb, km = jax.random.split(key, 8)

    x = jax.random.normal(kx, (BATCH, SEQ, D_MODEL), dtype=jnp.float32)
    enc = jax.random.normal(ke, (BATCH, SEQ, D_MODEL), dtype=jnp.float32)

    # Deterministic parameter init (uniform like torch.nn.Linear default bound).
    bound = 1.0 / math.sqrt(D_MODEL)
    wq = jax.random.uniform(kq, (D_MODEL, D_MODEL), jnp.float32, -bound, bound)
    wk = jax.random.uniform(kk, (D_MODEL, D_MODEL), jnp.float32, -bound, bound)
    wv = jax.random.uniform(kv, (D_MODEL, D_MODEL), jnp.float32, -bound, bound)
    wo = jax.random.uniform(ko, (D_MODEL, D_MODEL), jnp.float32, -bound, bound)
    bo = jax.random.uniform(kb, (D_MODEL,), jnp.float32, -bound, bound)

    # ---- mask=None path (module default).
    out = jax.block_until_ready(encoder_decoder_attention(x, enc, wq, wk, wv, wo, bo))
    ref = eda_reference(x, enc, wq, wk, wv, wo, bo)
    assert out.shape == (BATCH, SEQ, D_MODEL)
    # Tolerance accounts for bf16 MXU operands + approximate (EUP) softmax reciprocal
    # vs a pure-f32 reference.
    assert jnp.allclose(out, ref, atol=2e-2, rtol=2e-2), "mismatch vs reference (mask=None)"

    # ---- key-padding mask path.
    mask = (jax.random.uniform(km, (BATCH, SEQ)) < 0.3).astype(jnp.int32)
    mask = mask.at[:, 0].set(0)  # keep at least one attendable key per batch
    out_m = jax.block_until_ready(encoder_decoder_attention(x, enc, wq, wk, wv, wo, bo, mask))
    ref_m = eda_reference(x, enc, wq, wk, wv, wo, bo, mask)
    assert jnp.allclose(out_m, ref_m, atol=2e-2, rtol=2e-2), "mismatch vs reference (mask)"

    print("KERNEL_OK")
</pallas_src>

<mosaic_0001>
module attributes {stable_mosaic.version = 11 : i64} {
  func.func @eda_kernel(%arg0: memref<16x32xf32, #tpu.memory_space<vmem>>, %arg1: memref<16x32xf32, #tpu.memory_space<vmem>>, %arg2: memref<32x32xbf16, #tpu.memory_space<vmem>>, %arg3: memref<32x64xbf16, #tpu.memory_space<vmem>>, %arg4: memref<32x32xbf16, #tpu.memory_space<vmem>>, %arg5: memref<1x32xf32, #tpu.memory_space<vmem>>, %arg6: memref<64x64xf32, #tpu.memory_space<vmem>>, %arg7: memref<16x32xf32, #tpu.memory_space<vmem>>) attributes {dimension_semantics = [], scalar_prefetch = 0 : i64, scratch_operands = 0 : i64, tpu.core_type = #tpu.core_type<tc>} {
    %c0 = arith.constant 0 : index
    %c0_0 = arith.constant 0 : index
    %0 = vector.load %arg0[%c0, %c0_0] : memref<16x32xf32, #tpu.memory_space<vmem>>, vector<16x32xf32>
    %1 = arith.truncf %0 : vector<16x32xf32> to vector<16x32xbf16>
    %c0_1 = arith.constant 0 : index
    %c0_2 = arith.constant 0 : index
    %2 = vector.load %arg1[%c0_1, %c0_2] : memref<16x32xf32, #tpu.memory_space<vmem>>, vector<16x32xf32>
    %3 = arith.truncf %2 : vector<16x32xf32> to vector<16x32xbf16>
    %c0_3 = arith.constant 0 : index
    %c0_4 = arith.constant 0 : index
    %4 = vector.load %arg2[%c0_3, %c0_4] : memref<32x32xbf16, #tpu.memory_space<vmem>>, vector<32x32xbf16>
    %cst = arith.constant dense<0.000000e+00> : vector<16x32xf32>
    %5 = tpu.matmul %1, %4, %cst {dimension_numbers = #tpu.dot_dimension_numbers<[1], [0], [0], [1], [0, 0, 1, 1], [], []>} : vector<16x32xbf16>, vector<32x32xbf16>, vector<16x32xf32> -> vector<16x32xf32>
    %c0_5 = arith.constant 0 : index
    %c0_6 = arith.constant 0 : index
    %6 = vector.load %arg3[%c0_5, %c0_6] : memref<32x64xbf16, #tpu.memory_space<vmem>>, vector<32x64xbf16>
    %cst_7 = arith.constant dense<0.000000e+00> : vector<16x64xf32>
    %7 = tpu.matmul %3, %6, %cst_7 {dimension_numbers = #tpu.dot_dimension_numbers<[1], [0], [0], [1], [0, 0, 1, 1], [], []>} : vector<16x32xbf16>, vector<32x64xbf16>, vector<16x64xf32> -> vector<16x64xf32>
    %8 = vector.extract_strided_slice %5 {offsets = [0, 0], sizes = [16, 8], strides = [1, 1]} : vector<16x32xf32> to vector<16x8xf32>
    %9 = vector.extract_strided_slice %5 {offsets = [0, 8], sizes = [16, 8], strides = [1, 1]} : vector<16x32xf32> to vector<16x8xf32>
    %10 = vector.extract_strided_slice %5 {offsets = [0, 16], sizes = [16, 8], strides = [1, 1]} : vector<16x32xf32> to vector<16x8xf32>
    %11 = vector.extract_strided_slice %5 {offsets = [0, 24], sizes = [16, 8], strides = [1, 1]} : vector<16x32xf32> to vector<16x8xf32>
    %12 = tpu.concatenate %8, %9, %10, %11 in 0 : vector<16x8xf32>, vector<16x8xf32>, vector<16x8xf32>, vector<16x8xf32> -> vector<64x8xf32>
    %13 = arith.truncf %12 : vector<64x8xf32> to vector<64x8xbf16>
    %14 = vector.extract_strided_slice %7 {offsets = [0, 0], sizes = [16, 32], strides = [1, 1]} : vector<16x64xf32> to vector<16x32xf32>
    %15 = vector.extract_strided_slice %14 {offsets = [0, 0], sizes = [16, 8], strides = [1, 1]} : vector<16x32xf32> to vector<16x8xf32>
    %16 = vector.extract_strided_slice %14 {offsets = [0, 8], sizes = [16, 8], strides = [1, 1]} : vector<16x32xf32> to vector<16x8xf32>
    %17 = vector.extract_strided_slice %14 {offsets = [0, 16], sizes = [16, 8], strides = [1, 1]} : vector<16x32xf32> to vector<16x8xf32>
    %18 = vector.extract_strided_slice %14 {offsets = [0, 24], sizes = [16, 8], strides = [1, 1]} : vector<16x32xf32> to vector<16x8xf32>
    %19 = tpu.concatenate %15, %16, %17, %18 in 0 : vector<16x8xf32>, vector<16x8xf32>, vector<16x8xf32>, vector<16x8xf32> -> vector<64x8xf32>
    %20 = arith.truncf %19 : vector<64x8xf32> to vector<64x8xbf16>
    %21 = vector.extract_strided_slice %7 {offsets = [0, 32], sizes = [16, 32], strides = [1, 1]} : vector<16x64xf32> to vector<16x32xf32>
    %22 = vector.extract_strided_slice %21 {offsets = [0, 0], sizes = [16, 8], strides = [1, 1]} : vector<16x32xf32> to vector<16x8xf32>
    %23 = vector.extract_strided_slice %21 {offsets = [0, 8], sizes = [16, 8], strides = [1, 1]} : vector<16x32xf32> to vector<16x8xf32>
    %24 = vector.extract_strided_slice %21 {offsets = [0, 16], sizes = [16, 8], strides = [1, 1]} : vector<16x32xf32> to vector<16x8xf32>
    %25 = vector.extract_strided_slice %21 {offsets = [0, 24], sizes = [16, 8], strides = [1, 1]} : vector<16x32xf32> to vector<16x8xf32>
    %26 = tpu.concatenate %22, %23, %24, %25 in 0 : vector<16x8xf32>, vector<16x8xf32>, vector<16x8xf32>, vector<16x8xf32> -> vector<64x8xf32>
    %27 = arith.truncf %26 : vector<64x8xf32> to vector<64x8xbf16>
    "tpu.trace_start"() <{level = 10 : i32, message = "qd,kd->qk"}> : () -> ()
    %cst_8 = arith.constant dense<0.000000e+00> : vector<64x64xf32>
    %28 = tpu.matmul %13, %20, %cst_8 {dimension_numbers = #tpu.dot_dimension_numbers<[1], [1], [0], [0], [0, 0, 1, 0], [], []>} : vector<64x8xbf16>, vector<64x8xbf16>, vector<64x64xf32> -> vector<64x64xf32>
    "tpu.trace_stop"() : () -> ()
    %c0_9 = arith.constant 0 : index
    %c0_10 = arith.constant 0 : index
    %29 = vector.load %arg6[%c0_9, %c0_10] : memref<64x64xf32, #tpu.memory_space<vmem>>, vector<64x64xf32>
    %30 = arith.addf %28, %29 : vector<64x64xf32>
    %cst_11 = arith.constant dense<0xFF800000> : vector<64xf32>
    %31 = vector.multi_reduction <maximumf>, %30, %cst_11 [1] : vector<64x64xf32> to vector<64xf32>
    %32 = vector.shape_cast %31 : vector<64xf32> to vector<64x1xf32>
    %33 = vector.broadcast %32 : vector<64x1xf32> to vector<64x64xf32>
    %34 = arith.subf %30, %33 : vector<64x64xf32>
    %35 = math.exp %34 : vector<64x64xf32>
    %cst_12 = arith.constant dense<0.000000e+00> : vector<64xf32>
    %36 = vector.multi_reduction <add>, %35, %cst_12 [1] : vector<64x64xf32> to vector<64xf32>
    %37 = vector.shape_cast %36 : vector<64xf32> to vector<64x1xf32>
    %38 = arith.truncf %35 : vector<64x64xf32> to vector<64x64xbf16>
    %cst_13 = arith.constant dense<0.000000e+00> : vector<64x8xf32>
    %39 = tpu.matmul %38, %27, %cst_13 {dimension_numbers = #tpu.dot_dimension_numbers<[1], [0], [0], [1], [0, 0, 1, 1], [], []>} : vector<64x64xbf16>, vector<64x8xbf16>, vector<64x8xf32> -> vector<64x8xf32>
    %40 = tpu.reciprocal %37 {approx = true} : vector<64x1xf32> -> vector<64x1xf32>
    %41 = vector.broadcast %40 : vector<64x1xf32> to vector<64x8xf32>
    %42 = arith.mulf %39, %41 : vector<64x8xf32>
    %43 = vector.extract_strided_slice %42 {offsets = [0, 0], sizes = [16, 8], strides = [1, 1]} : vector<64x8xf32> to vector<16x8xf32>
    %44 = vector.extract_strided_slice %42 {offsets = [16, 0], sizes = [16, 8], strides = [1, 1]} : vector<64x8xf32> to vector<16x8xf32>
    %45 = vector.extract_strided_slice %42 {offsets = [32, 0], sizes = [16, 8], strides = [1, 1]} : vector<64x8xf32> to vector<16x8xf32>
    %46 = vector.extract_strided_slice %42 {offsets = [48, 0], sizes = [16, 8], strides = [1, 1]} : vector<64x8xf32> to vector<16x8xf32>
    %47 = tpu.concatenate %43, %44, %45, %46 in 1 : vector<16x8xf32>, vector<16x8xf32>, vector<16x8xf32>, vector<16x8xf32> -> vector<16x32xf32>
    %48 = arith.truncf %47 : vector<16x32xf32> to vector<16x32xbf16>
    %c0_14 = arith.constant 0 : index
    %c0_15 = arith.constant 0 : index
    %49 = vector.load %arg4[%c0_14, %c0_15] : memref<32x32xbf16, #tpu.memory_space<vmem>>, vector<32x32xbf16>
    %cst_16 = arith.constant dense<0.000000e+00> : vector<16x32xf32>
    %50 = tpu.matmul %48, %49, %cst_16 {dimension_numbers = #tpu.dot_dimension_numbers<[1], [0], [0], [1], [0, 0, 1, 1], [], []>} : vector<16x32xbf16>, vector<32x32xbf16>, vector<16x32xf32> -> vector<16x32xf32>
    %c0_17 = arith.constant 0 : index
    %c0_18 = arith.constant 0 : index
    %51 = vector.load %arg5[%c0_17, %c0_18] : memref<1x32xf32, #tpu.memory_space<vmem>>, vector<1x32xf32>
    %52 = vector.broadcast %51 : vector<1x32xf32> to vector<16x32xf32>
    %53 = arith.addf %50, %52 : vector<16x32xf32>
    %c0_19 = arith.constant 0 : index
    %c0_20 = arith.constant 0 : index
    %54 = vector.load %arg7[%c0_19, %c0_20] : memref<16x32xf32, #tpu.memory_space<vmem>>, vector<16x32xf32>
    tpu.vector_store %arg7[%c0_19, %c0_20], %53 {strides = array<i32>} : memref<16x32xf32, #tpu.memory_space<vmem>>, vector<16x32xf32>,
    return
  }
}

</mosaic_0001>

<bundles_post_ra>
// kernel: tpu_custom_call.1
= control target key start
LH: loop header
LB: loop body
LE: loop exit
PB: predicated region body
PF: predicated region fallthrough
CT: control target
= control target key end

     0   :  { %12 = vsyncpa [#allocation3], 0  ;;  %s1293_s0 = inlined_call_operand.hbm [shape: f32[16,32], index: 0, kind: input, shape index: {}]   ;;  %s1294_s1 = inlined_call_operand.hbm [shape: f32[16,32], index: 1, kind: input, shape index: {}]   ;;  %s1295_s2 = inlined_call_operand.hbm [shape: bf16[32,32], index: 2, kind: input, shape index: {}]   ;;  %s1296_s3 = inlined_call_operand.hbm [shape: bf16[32,64], index: 3, kind: input, shape index: {}]   ;;  %s1297_s4 = inlined_call_operand.hbm [shape: bf16[32,32], index: 4, kind: input, shape index: {}]   ;;  %s1298_s5 = inlined_call_operand.vmem [shape: f32[1,32], index: 5, kind: input, shape index: {}]   ;;  %s1299_s6 = inlined_call_operand.hbm [shape: f32[64,64], index: 6, kind: input, shape index: {}]   ;;  %s1300_s7 = inlined_call_operand.hbm [shape: f32[16,32], index: 7, kind: output, shape index: {}]  }
   0x1   :  { %13 = vsyncpa [#allocation6], 0 }
   0x2   :  { %14 = vsyncpa [#allocation9], 0 }
   0x3   :  { %15 = vsyncpa [#allocation12], 0 }
   0x4   :  { %16 = vsyncpa [#allocation4], 0  ;;  %s1060_s24 = smov [#allocation5]   ;;  %s896_s28 = scalar_lea.hbm %s1294_s1, 256 }
   0x5   :  { %s34_s25 = sshll.u32 %s1060_s24, 4  ;;  %p897_p0 = scmp.ne.s32.totalorder %s1294_s1, %s896_s28  ;;  %s35_s25 = int_to_ptr.vmem [resolvable:$true] %s34_s25 }
   0x6   :  { %p900_p1 = scmp.lt.u32.totalorder %s896_s28, %s1294_s1 }
   0x8   :  { %p902_p2 = pnand %p900_p1, %p897_p0 }
   0xa   :  { %905 = shalt.err (!%p902_p2)
}
   0xb   :  { %s906_s10 = scalar_lea.vmem %s35_s25, 256  ;;  %p911_p4 = scmp.lt.s32.totalorder %s35_s25, %s35_s25 }
   0xc   :  { %p907_p3 = scmp.ne.s32.totalorder %s35_s25, %s906_s10  ;;  %p912_p5 = scmp.lt.s32.totalorder %s906_s10, %s906_s10 }
   0xe   :  { %p913_p6 = por %p912_p5, %p911_p4 }
  0x10   :  { %p914_p7 = pnand %p913_p6, %p907_p3 }
  0x12   :  { %917 = shalt.err (!%p914_p7)
}
  0x13   :  { %s1061_s11 = smov 128   ;;  %s1062_s12 = smov 8  }
  0x14   :  { %40 = dma.hbm_to_vmem [thread:$0]  %s1294_s1, 256, %s35_s25, [#allocation6], %s1061_s11, %s1061_s11, %s1062_s12  }
  0x15   :  { %s1063_s15 = smov [#allocation8]   ;;  %s1064_s17 = smov [#allocation2]  }
  0x16   :  { %s58_s16 = sshll.u32 %s1063_s15, 4  ;;  %s22_s18 = sshll.u32 %s1064_s17, 4  ;;  %s59_s16 = int_to_ptr.vmem [resolvable:$true] %s58_s16  ;;  %s23_s18 = int_to_ptr.vmem [resolvable:$true] %s22_s18 }
  0x17   :  { %s918_s21 = scalar_lea.hbm %s1296_s3, 256 }
  0x18   :  { %p919_p8 = scmp.ne.s32.totalorder %s1296_s3, %s918_s21  ;;  %p922_p9 = scmp.lt.u32.totalorder %s918_s21, %s1296_s3 }
  0x1a   :  { %p924_p10 = pnand %p922_p9, %p919_p8 }
  0x1c   :  { %927 = shalt.err (!%p924_p10)
}
  0x1d   :  { %s928_s1 = scalar_lea.vmem %s59_s16, 256  ;;  %p933_p12 = scmp.lt.s32.totalorder %s59_s16, %s59_s16 }
  0x1e   :  { %p929_p11 = scmp.ne.s32.totalorder %s59_s16, %s928_s1  ;;  %p934_p13 = scmp.lt.s32.totalorder %s928_s1, %s928_s1 }
  0x20   :  { %p935_p0 = por %p934_p13, %p933_p12 }
  0x22   :  { %p936_p1 = pnand %p935_p0, %p929_p11 }
  0x24   :  { %939 = shalt.err (!%p936_p1)
}
  0x25   :  { %s1065_s25 = smov 64   ;;  %s1066_s27 = smov 4  }
  0x26   :  { %64 = dma.hbm_to_vmem [thread:$0]  %s1296_s3, 256, %s59_s16, [#allocation9], %s1065_s25, %s1065_s25, %s1066_s27  }
  0x27   :  { %s940_s9 = scalar_lea.hbm %s1293_s0, 256 }
  0x28   :  { %p941_p2 = scmp.ne.s32.totalorder %s1293_s0, %s940_s9  ;;  %p944_p3 = scmp.lt.u32.totalorder %s940_s9, %s1293_s0 }
  0x2a   :  { %p946_p4 = pnand %p944_p3, %p941_p2 }
  0x2c   :  { %949 = shalt.err (!%p946_p4)
}
  0x2d   :  { %s950_s17 = scalar_lea.vmem %s23_s18, 256  ;;  %p955_p6 = scmp.lt.s32.totalorder %s23_s18, %s23_s18 }
  0x2e   :  { %p951_p5 = scmp.ne.s32.totalorder %s23_s18, %s950_s17  ;;  %p956_p7 = scmp.lt.s32.totalorder %s950_s17, %s950_s17 }
  0x30   :  { %p957_p8 = por %p956_p7, %p955_p6 }
  0x32   :  { %p958_p9 = pnand %p957_p8, %p951_p5 }
  0x34   :  { %961 = shalt.err (!%p958_p9)
}
  0x35   :  { %28 = dma.hbm_to_vmem [thread:$0]  %s1293_s0, 256, %s23_s18, [#allocation3], %s1061_s11, %s1061_s11, %s1062_s12  }
  0x36   :  { %s1067_s19 = smov [#allocation7]   ;;  %s1068_s21 = smov [#allocation10]  }
  0x37   :  { %s46_s20 = sshll.u32 %s1067_s19, 4  ;;  %s70_s22 = sshll.u32 %s1068_s21, 4  ;;  %s47_s20 = int_to_ptr.vmem [resolvable:$true] %s46_s20  ;;  %s71_s22 = int_to_ptr.vmem [resolvable:$true] %s70_s22 }
  0x38   :  { %s962_s26 = scalar_lea.hbm %s1295_s2, 256 }
  0x39   :  { %p963_p10 = scmp.ne.s32.totalorder %s1295_s2, %s962_s26  ;;  %p966_p11 = scmp.lt.u32.totalorder %s962_s26, %s1295_s2 }
  0x3b   :  { %p968_p12 = pnand %p966_p11, %p963_p10 }
  0x3d   :  { %971 = shalt.err (!%p968_p12)
}
  0x3e   :  { %s972_s0 = scalar_lea.vmem %s47_s20, 256  ;;  %p977_p0 = scmp.lt.s32.totalorder %s47_s20, %s47_s20 }
  0x3f   :  { %p973_p13 = scmp.ne.s32.totalorder %s47_s20, %s972_s0  ;;  %p978_p1 = scmp.lt.s32.totalorder %s972_s0, %s972_s0 }
  0x41   :  { %p979_p2 = por %p978_p1, %p977_p0 }
  0x43   :  { %p980_p3 = pnand %p979_p2, %p973_p13 }
  0x45   :  { %983 = shalt.err (!%p980_p3)
}
  0x46   :  { %52 = dma.hbm_to_vmem [thread:$0]  %s1295_s2, 256, %s47_s20, [#allocation6], %s1065_s25, %s1065_s25, %s1066_s27  }
  0x47   :  { %s984_s13 = scalar_lea.hbm %s1297_s4, 256 }
  0x48   :  { %p985_p4 = scmp.ne.s32.totalorder %s1297_s4, %s984_s13  ;;  %p988_p5 = scmp.lt.u32.totalorder %s984_s13, %s1297_s4 }
  0x4a   :  { %p990_p6 = pnand %p988_p5, %p985_p4 }
  0x4c   :  { %993 = shalt.err (!%p990_p6)
}
  0x4d   :  { %s994_s16 = scalar_lea.vmem %s71_s22, 256  ;;  %p999_p8 = scmp.lt.s32.totalorder %s71_s22, %s71_s22 }
  0x4e   :  { %p995_p7 = scmp.ne.s32.totalorder %s71_s22, %s994_s16  ;;  %p1000_p9 = scmp.lt.s32.totalorder %s994_s16, %s994_s16 }
  0x50   :  { %p1001_p10 = por %p1000_p9, %p999_p8 }
  0x52   :  { %p1002_p11 = pnand %p1001_p10, %p995_p7 }
  0x54   :  { %1005 = shalt.err (!%p1002_p11)
}
  0x55   :  { %76 = dma.hbm_to_vmem [thread:$0]  %s1297_s4, 256, %s71_s22, [#allocation9], %s1065_s25, %s1065_s25, %s1066_s27  }
  0x56   :  { %s1069_s20 = smov [#allocation11]   ;;  %s1006_s26 = scalar_lea.hbm %s1299_s6, 1024 }
  0x57   :  { %s84_s21 = sshll.u32 %s1069_s20, 4  ;;  %p1007_p12 = scmp.ne.s32.totalorder %s1299_s6, %s1006_s26  ;;  %s85_s21 = int_to_ptr.vmem [resolvable:$true] %s84_s21 }
  0x58   :  { %p1010_p13 = scmp.lt.u32.totalorder %s1006_s26, %s1299_s6 }
  0x5a   :  { %p1012_p0 = pnand %p1010_p13, %p1007_p12 }
  0x5c   :  { %1015 = shalt.err (!%p1012_p0)
}
  0x5d   :  { %s1016_s0 = scalar_lea.vmem %s85_s21, 1024  ;;  %p1021_p2 = scmp.lt.s32.totalorder %s85_s21, %s85_s21 }
  0x5e   :  { %p1017_p1 = scmp.ne.s32.totalorder %s85_s21, %s1016_s0  ;;  %p1022_p3 = scmp.lt.s32.totalorder %s1016_s0, %s1016_s0 }
  0x60   :  { %p1023_p4 = por %p1022_p3, %p1021_p2 }
  0x62   :  { %p1024_p5 = pnand %p1023_p4, %p1017_p1 }
  0x64   :  { %1027 = shalt.err (!%p1024_p5)
}
  0x65   :  { %90 = dma.hbm_to_vmem [thread:$0]  %s1299_s6, 1024, %s85_s21, [#allocation12], %s1061_s11, %s1061_s11, %s1062_s12  }
  0x66   :  { %1050 = dma.done.wait [#allocation3], 256  }
  0x67   :  { %1051 = vsyncadd [#allocation3], 4294967040 }
  0x68   :  { %1052 = dma.done.wait [#allocation6], 512  }
  0x69   :  { %1053 = vsyncadd [#allocation6], 4294966784 }
  0x6a   :  { %1054 = dma.done.wait [#allocation9], 512  }
  0x6b   :  { %1055 = vsyncadd [#allocation9], 4294966784 }
  0x6c   :  { %1056 = dma.done.wait [#allocation12], 1024  }
  0x6d   :  { %1057 = vsyncadd [#allocation12], 4294966272  ;;  %v1070_v0 = vmov 0.0   ;;  %vm1071_vm0 = vmmov 0   ;;  %v858_v1 = vld [vmem:[#allocation8] sm:$0xff]   ;;  %v859_v2 = vld [vmem:[#allocation7] sm:$0xff]  }
  0x6e   :  { %742 = vmatprep.subr.bf16.mxu1 %v1070_v0  ;;  %734 = vmatprep.subr.bf16.mxu0 %v1070_v0  ;;  %v860_v3 = vld [vmem:[#allocation8 + $0x8] sm:$0xff]   ;;  %v113_v4 = vld [vmem:[#allocation5] sm:$0xff]  ;;  %v861_v6 = vld [vmem:[#allocation7 + $0x8] sm:$0xff]   ;;  %vm132_vm1 = vcmask 261120   ;;  %vm293_vm2 = vcmask 64512   ;;  %s1072_s6 = smov 104  }
  0x6f   :  { %746 = vmatprep.mubr.msk.bf16.mxu1 %vm1071_vm0, %v1070_v0  ;;  %738 = vmatprep.mubr.msk.bf16.mxu0 %vm1071_vm0, %v1070_v0  ;;  %v114_v5 = vld [vmem:[#allocation5 + $0x8] sm:$0xff]  ;;  %v110_v7 = vld [vmem:[#allocation2] sm:$0xff]  ;;  %v111_v9 = vld [vmem:[#allocation2 + $0x8] sm:$0xff]  ;;  %s1073_s27 = smov 120   ;;  %s1074_s22 = smov 112   ;;  %vm383_vm3 = vcmask 523264  }
  0x70   :  { %743 = vmatpush3.bf16.msra.mxu1 %v858_v1  ;;  %735 = vmatpush3.bf16.msra.mxu0 %v859_v2  ;;  %v115_v8 = vpack.c.bf16 %v114_v5, %v113_v4  ;;  %v112_v10 = vpack.c.bf16 %v111_v9, %v110_v7  ;;  %s1075_s18 = smov 96   ;;  %v287_v52 = vld [vmem:[#allocation11 + $0x10] sm:$0xff]  ;;  %v285_v54 = vld [vmem:[#allocation11] sm:$0xff]  ;;  %v286_v57 = vld [vmem:[#allocation11 + $0x8] sm:$0xff]  ;;  %s1076_s8 = smov 24   ;;  %vm595_vm4 = vcmask 130048  }
  0x71   :  { %744 = vmatprep.subr.bf16.mxu1 %v1070_v0  ;;  %736 = vmatprep.subr.bf16.mxu0 %v1070_v0  ;;  %v288_v62 = vld [vmem:[#allocation11 + $0x18] sm:$0xff]  ;;  %v291_v2 = vld [vmem:[#allocation11 + $0x30] sm:$0xff]  ;;  %s1077_s9 = smov 16   ;;  %vm598_vm5 = vcmask 195584   ;;  %s1078_s14 = smov [#allocation13]  }
  0x72   :  { %v292_v7 = vld [vmem:[#allocation11 + $0x38] sm:$0xff]  ;;  %s676_s15 = sshll.u32 %s1078_s14, 4  ;;  %s677_s15 = int_to_ptr.vmem [resolvable:$true] %s676_s15 }
  0x73   :  { %s1028_s17 = scalar_lea.vmem %s677_s15, 256  ;;  %p1033_p7 = scmp.lt.s32.totalorder %s677_s15, %s677_s15 }
  0x74   :  { %745 = vmatpush3.bf16.msra.mxu1 %v860_v3  ;;  %737 = vmatpush3.bf16.msra.mxu0 %v861_v6  ;;  %v289_v6 = vld [vmem:[#allocation11 + $0x20] sm:$0xff]  ;;  %p1029_p6 = scmp.ne.s32.totalorder %s677_s15, %s1028_s17  ;;  %p1034_p8 = scmp.lt.s32.totalorder %s1028_s17, %s1028_s17 }
  0x76   :  { %p1035_p9 = por %p1034_p8, %p1033_p7 }
  0x77   :  { %747 = vmatmul.mubr.msk.bf16.vlgmr.msra.gmra.mrb[0].mxu1 %vm132_vm1, %v115_v8  ;;  %739 = vmatmul.mubr.msk.bf16.vlgmr.msra.gmra.mrb[0].mxu0 %vm132_vm1, %v112_v10 }
  0x78   :  { %p1036_p10 = pnand %p1035_p9, %p1029_p6 }
 0x14a   :  { %v230_v11 = vpop.f32.mrb[0].mxu1  ;;  %v170_v13 = vpop.f32.mrb[0].mxu0 }
 0x14b   :  { %v748_v12 = vpop.f32.mrb[1].mxu1  ;;  %v740_v15 = vpop.f32.mrb[1].mxu0 }
 0x14c   :  { %v233_v14 = vpop.f32.mrb[2].mxu1  ;;  %v173_v19 = vpop.f32.mrb[2].mxu0 }
 0x14d   :  { %v281_v16 = vpack.c.bf16 %v233_v14, %v230_v11  ;;  %v749_v17 = vpop.f32.mrb[3].mxu1  ;;  %v823_v18 = vpack.i.bf16 %v233_v14, %v230_v11  ;;  %v257_v20 = vpack.c.bf16 %v173_v19, %v170_v13  ;;  %v828_v21 = vpack.i.bf16 %v173_v19, %v170_v13  ;;  %v741_v22 = vpop.f32.mrb[3].mxu0 }
 0x14f   :  { %824 = vrot.lane.b32.xlu1 %v823_v18, %s1072_s6  ;;  %814 = vrot.lane.b32.xlu0 %v823_v18, %s1073_s27  ;;  %v307_v23 = vsel %vm293_vm2, %v281_v16, 0 }
 0x150   :  { %790 = vmatprep.subr.msk.bf16.mxu0 %vm293_vm2, %v281_v16  ;;  %758 = vmatprep.mubr.msk.bf16.mxu0 %vm293_vm2, %v257_v20 }
 0x151   :  { %751 = vmatpush3.bf16.xpose.msra.mxu0 %v307_v23 }
 0x153   :  { %819 = vrot.lane.b32.xlu0 %v823_v18, %s1074_s22  ;;  %829 = vrot.lane.b32.xlu1 %v828_v21, %s1073_s27 }
 0x157   :  { %839 = vrot.lane.b32.xlu1 %v828_v21, %s1072_s6  ;;  %834 = vrot.lane.b32.xlu0 %v828_v21, %s1074_s22 }
 0x15b   :  { %464 = vrot.lane.b32.xlu1 %v281_v16, %s1075_s18  ;;  %v290_v16 = vld [vmem:[#allocation11 + $0x28] sm:$0xff] }
 0x1c1   :  { %v825_v24 = vpop.permute.xlu1 %824  ;;  %v815_v25 = vpop.permute.xlu0 %814 }
 0x1c2   :  { %v817_v26 = vunpack.i.h.bf16 %v815_v25  ;;  %v816_v27 = vunpack.i.l.bf16 %v815_v25  ;;  %v827_v36 = vunpack.i.h.bf16 %v825_v24  ;;  %v826_v37 = vunpack.i.l.bf16 %v825_v24 }
 0x1c4   :  { %v1223_v28 = vpack.c.bf16 %v817_v26, %v816_v27  ;;  %v284_v39 = vpack.c.bf16 %v827_v36, %v826_v37 }
 0x1c5   :  { %v820_v29 = vpop.permute.xlu0 %819  ;;  %v830_v30 = vpop.permute.xlu1 %829 }
 0x1c6   :  { %v822_v31 = vunpack.i.h.bf16 %v820_v29  ;;  %v821_v32 = vunpack.i.l.bf16 %v820_v29  ;;  %791 = vmatprep.subr.msk.bf16.mxu0 %vm293_vm2, %v1223_v28  ;;  %v310_v33 = vsel %vm293_vm2, %v1223_v28, 0  ;;  %v316_v41 = vsel %vm293_vm2, %v284_v39, 0 }
 0x1c7   :  { %753 = vmatpush3.bf16.xpose.msra.mxu0 %v310_v33  ;;  %v832_v43 = vunpack.i.h.bf16 %v830_v30  ;;  %v831_v44 = vunpack.i.l.bf16 %v830_v30 }
 0x1c8   :  { %v1229_v34 = vpack.c.bf16 %v822_v31, %v821_v32 }
 0x1c9   :  { %v840_v35 = vpop.permute.xlu1 %839  ;;  %v835_v42 = vpop.permute.xlu0 %834  ;;  %v258_v47 = vpack.c.bf16 %v832_v43, %v831_v44 }
 0x1ca   :  { %792 = vmatprep.subr.msk.bf16.mxu0 %vm293_vm2, %v1229_v34  ;;  %v313_v40 = vsel %vm293_vm2, %v1229_v34, 0  ;;  %v837_v45 = vunpack.i.h.bf16 %v835_v42  ;;  %v836_v46 = vunpack.i.l.bf16 %v835_v42  ;;  %v842_v49 = vunpack.i.h.bf16 %v840_v35 }
 0x1cb   :  { %v841_v50 = vunpack.i.l.bf16 %v840_v35 }
 0x1cc   :  { %v259_v48 = vpack.c.bf16 %v837_v45, %v836_v46 }
 0x1cd   :  { %v465_v38 = vpop.permute.xlu1 %464  ;;  %v260_v51 = vpack.c.bf16 %v842_v49, %v841_v50 }
 0x1ce   :  { %766 = vmatprep.subr.bf16.mxu1 %v465_v38 }
 0x1cf   :  { %767 = vmatpush3.bf16.msra.mxu1 %v465_v38  ;;  %755 = vmatpush3.bf16.xpose.msra.mxu0 %v313_v40 }
 0x1d0   :  { %793 = vmatprep.subr.msk.bf16.mxu0 %vm293_vm2, %v284_v39 }
 0x1d7   :  { %757 = vmatpush3.bf16.xpose.msra.mxu0 %v316_v41 }
 0x1de   :  { %759 = vmatmul.mubr.msk.bf16.vlgmr.msra.gmra.mrb[4].mxu0 %vm293_vm2, %v258_v47 }
 0x1df   :  { %762 = vmatprep.mubr.msk.bf16.mxu0 %vm293_vm2, %v259_v48 }
 0x1e6   :  { %763 = vmatmul.mubr.msk.bf16.gmra.mrb[8].mxu0 %vm293_vm2, %v260_v51 }
 0x2b1   :  { %v760_v53 = vpop.f32.mrb[4].mxu0 }
 0x2b2   :  { %v361_v55 = vadd.f32 %v760_v53, %v287_v52  ;;  %v352_v56 = vpop.f32.mrb[5].mxu0 }
 0x2b3   :  { %v761_v58 = vpop.f32.mrb[6].mxu0  ;;  %v353_v59 = vadd.f32 %v352_v56, %v285_v54 }
 0x2b4   :  { %v355_v60 = vpop.f32.mrb[7].mxu0  ;;  %v390_v61 = vsel %vm383_vm3, %v361_v55, -inf  ;;  %v364_v3 = vadd.f32 %v761_v58, %v288_v62 }
 0x2b5   :  { %v356_v63 = vadd.f32 %v355_v60, %v286_v57  ;;  %391 = vmax.xlane.f32.xlu0 %v390_v61  ;;  %v384_v4 = vsel %vm383_vm3, %v353_v59, -inf }
 0x2b6   :  { %v393_v15 = vsel %vm383_vm3, %v364_v3, -inf }
 0x2b7   :  { %v387_v1 = vsel %vm383_vm3, %v356_v63, -inf }
 0x2b8   :  { %388 = vmax.xlane.f32.xlu1 %v387_v1 }
 0x2b9   :  { %v764_v5 = vpop.f32.mrb[8].mxu0  ;;  %385 = vmax.xlane.f32.xlu0 %v384_v4 }
 0x2ba   :  { %v377_v8 = vadd.f32 %v764_v5, %v291_v2  ;;  %v368_v9 = vpop.f32.mrb[9].mxu0  ;;  %v862_v5 = vld [vmem:[#allocation10] sm:$0xff]  }
 0x2bb   :  { %v765_v10 = vpop.f32.mrb[10].mxu0  ;;  %v369_v11 = vadd.f32 %v368_v9, %v289_v6 }
 0x2bc   :  { %v380_v12 = vadd.f32 %v765_v10, %v292_v7  ;;  %v371_v13 = vpop.f32.mrb[11].mxu0  ;;  %v402_v14 = vsel %vm383_vm3, %v377_v8, -inf }
 0x2bd   :  { %403 = vmax.xlane.f32.xlu1 %v402_v14  ;;  %394 = vmax.xlane.f32.xlu0 %v393_v15  ;;  %v372_v17 = vadd.f32 %v371_v13, %v290_v16  ;;  %v396_v18 = vsel %vm383_vm3, %v369_v11, -inf }
 0x2be   :  { %v405_v19 = vsel %vm383_vm3, %v380_v12, -inf }
 0x2bf   :  { %v399_v20 = vsel %vm383_vm3, %v372_v17, -inf }
 0x2c1   :  { %397 = vmax.xlane.f32.xlu1 %v396_v18  ;;  %406 = vmax.xlane.f32.xlu0 %v405_v19 }
 0x2c5   :  { %400 = vmax.xlane.f32.xlu0 %v399_v20 }
 0x2d2   :  { %468 = vrot.lane.b32.xlu1 %v1229_v34, %s1075_s18 }
 0x2d6   :  { %470 = vrot.lane.b32.xlu1 %v284_v39, %s1075_s18 }
 0x2db   :  { %466 = vrot.lane.b32.xlu0 %v1223_v28, %s1075_s18 }
 0x342   :  { %v392_v21 = vpop.xlane.xlu0 %391 }
 0x343   :  { %v410_v22 = vsub.f32 %v361_v55, %v392_v21 }
 0x345   :  { %v420_v23 = vmul.f32 1.442695, %v410_v22  ;;  %v389_v24 = vpop.xlane.xlu1 %388 }
 0x346   :  { %v409_v25 = vsub.f32 %v356_v63, %v389_v24  ;;  %v386_v26 = vpop.xlane.xlu0 %385 }
 0x347   :  { %864 = vpow2.f32 %v420_v23  ;;  %v408_v27 = vsub.f32 %v353_v59, %v386_v26 }
 0x348   :  { %v418_v29 = vmul.f32 1.442695, %v409_v25 }
 0x349   :  { %v416_v30 = vmul.f32 1.442695, %v408_v27 }
 0x34a   :  { %866 = vpow2.f32 %v418_v29  ;;  %v404_v31 = vpop.xlane.xlu1 %403  ;;  %v395_v32 = vpop.xlane.xlu0 %394 }
 0x34b   :  { %868 = vpow2.f32 %v416_v30  ;;  %v414_v33 = vsub.f32 %v377_v8, %v404_v31  ;;  %v411_v34 = vsub.f32 %v364_v3, %v395_v32 }
 0x34d   :  { %v422_v35 = vmul.f32 1.442695, %v411_v34  ;;  %v428_v36 = vmul.f32 1.442695, %v414_v33 }
 0x34e   :  { %v398_v37 = vpop.xlane.xlu1 %397  ;;  %v407_v28 = vpop.xlane.xlu0 %406 }
 0x34f   :  { %v412_v38 = vsub.f32 %v369_v11, %v398_v37  ;;  %870 = vpow2.f32 %v422_v35  ;;  %v415_v41 = vsub.f32 %v380_v12, %v407_v28  ;;  %v863_v11 = vld [vmem:[#allocation10 + $0x8] sm:$0xff]  }
 0x350   :  { %872 = vpow2.f32 %v428_v36 }
 0x351   :  { %v865_v39 = vpop.eup %864  ;;  %v424_v40 = vmul.f32 1.442695, %v412_v38  ;;  %v430_v47 = vmul.f32 1.442695, %v415_v41 }
 0x352   :  { %v401_v42 = vpop.xlane.xlu0 %400  ;;  %v438_v43 = vsel %vm383_vm3, %v865_v39, 0.0  ;;  %v469_v49 = vpop.permute.xlu1 %468 }
 0x353   :  { %874 = vpow2.f32 %v424_v40  ;;  %v413_v44 = vsub.f32 %v372_v17, %v401_v42  ;;  %439 = vadd.xlane.f32.xlu0 %v438_v43 }
 0x354   :  { %v867_v45 = vpop.eup %866 }
 0x355   :  { %v869_v46 = vpop.eup %868  ;;  %v426_v48 = vmul.f32 1.442695, %v413_v44  ;;  %v435_v4 = vsel %vm383_vm3, %v867_v45, 0.0 }
 0x356   :  { %v467_v50 = vpop.permute.xlu0 %466  ;;  %v456_v51 = vpack.c.bf16 %v867_v45, %v869_v46  ;;  %v471_v55 = vpop.permute.xlu1 %470  ;;  %v432_v1 = vsel %vm383_vm3, %v869_v46, 0.0 }
 0x357   :  { %876 = vpow2.f32 %v426_v48  ;;  %768 = vmatprep.subr.bf16.mxu1 %v467_v50 }
 0x358   :  { %769 = vmatpush3.bf16.msra.mxu1 %v467_v50  ;;  %774 = vmatprep.mubr.msk.bf16.mxu1 %vm383_vm3, %v456_v51  ;;  %878 = vpow2.f32 %v430_v47 }
 0x359   :  { %770 = vmatprep.subr.bf16.mxu1 %v469_v49  ;;  %v871_v52 = vpop.eup %870 }
 0x35a   :  { %v441_v53 = vsel %vm383_vm3, %v871_v52, 0.0  ;;  %v873_v54 = vpop.eup %872  ;;  %v457_v60 = vpack.c.bf16 %v871_v52, %v865_v39 }
 0x35b   :  { %442 = vadd.xlane.f32.xlu1 %v441_v53  ;;  %v450_v58 = vsel %vm383_vm3, %v873_v54, 0.0 }
 0x35c   :  { %771 = vmatpush3.bf16.msra.mxu1 %v469_v49 }
 0x35d   :  { %v875_v56 = vpop.eup %874  ;;  %772 = vmatprep.subr.bf16.mxu1 %v471_v55 }
 0x35e   :  { %v444_v57 = vsel %vm383_vm3, %v875_v56, 0.0 }
 0x35f   :  { %445 = vadd.xlane.f32.xlu0 %v444_v57  ;;  %451 = vadd.xlane.f32.xlu1 %v450_v58  ;;  %v705_v57 = vld [vmem:[%s1298_s5] ss:$0 sm:$0xff] }
 0x360   :  { %773 = vmatpush3.bf16.msra.mxu1 %v471_v55 }
 0x361   :  { %v877_v59 = vpop.eup %876  ;;  %782 = vmatprep.subr.bf16.mxu1 %v1070_v0 }
 0x362   :  { %v447_v61 = vsel %vm383_vm3, %v877_v59, 0.0  ;;  %v458_v62 = vpack.c.bf16 %v877_v59, %v875_v56  ;;  %v879_v63 = vpop.eup %878 }
 0x363   :  { %448 = vadd.xlane.f32.xlu0 %v447_v61  ;;  %775 = vmatmul.mubr.msk.bf16.vlgmr.msra.gmra.mrb[4].mxu1 %vm383_vm3, %v457_v60  ;;  %v453_v2 = vsel %vm383_vm3, %v879_v63, 0.0  ;;  %v459_v3 = vpack.c.bf16 %v879_v63, %v873_v54 }
 0x364   :  { %433 = vadd.xlane.f32.xlu1 %v432_v1  ;;  %778 = vmatprep.mubr.msk.bf16.mxu1 %vm383_vm3, %v458_v62 }
 0x365   :  { %783 = vmatpush3.bf16.msra.mxu1 %v862_v5 }
 0x366   :  { %784 = vmatprep.subr.bf16.mxu1 %v1070_v0 }
 0x367   :  { %454 = vadd.xlane.f32.xlu0 %v453_v2 }
 0x369   :  { %785 = vmatpush3.bf16.msra.mxu1 %v863_v11 }
 0x36b   :  { %436 = vadd.xlane.f32.xlu0 %v435_v4  ;;  %779 = vmatmul.mubr.msk.bf16.gmra.mrb[8].mxu1 %vm383_vm3, %v459_v3 }
 0x36c   :  { %786 = vmatprep.mubr.msk.bf16.mxu1 %vm1071_vm0, %v1070_v0 }
 0x3e0   :  { %v440_v6 = vpop.xlane.xlu0 %439 }
 0x3e1   :  { %880 = vrcp.f32 %v440_v6 }
 0x3e8   :  { %v443_v8 = vpop.xlane.xlu1 %442 }
 0x3e9   :  { %882 = vrcp.f32 %v443_v8 }
 0x3eb   :  { %v881_v14 = vpop.eup %880 }
 0x3ec   :  { %v446_v7 = vpop.xlane.xlu0 %445  ;;  %v452_v10 = vpop.xlane.xlu1 %451 }
 0x3ed   :  { %884 = vrcp.f32 %v446_v7 }
 0x3ee   :  { %886 = vrcp.f32 %v452_v10 }
 0x3f0   :  { %v449_v9 = vpop.xlane.xlu0 %448 }
 0x3f1   :  { %v434_v36 = vpop.xlane.xlu1 %433 }
 0x3f3   :  { %v883_v16 = vpop.eup %882 }
 0x3f4   :  { %v455_v12 = vpop.xlane.xlu0 %454 }
 0x3f5   :  { %888 = vrcp.f32 %v455_v12 }
 0x3f6   :  { %890 = vrcp.f32 %v449_v9 }
 0x3f7   :  { %v885_v21 = vpop.eup %884  ;;  %892 = vrcp.f32 %v434_v36 }
 0x3f8   :  { %v887_v23 = vpop.eup %886  ;;  %v437_v37 = vpop.xlane.xlu0 %436 }
 0x3f9   :  { %894 = vrcp.f32 %v437_v37 }
 0x3ff   :  { %v889_v25 = vpop.eup %888 }
 0x400   :  { %v891_v27 = vpop.eup %890 }
 0x401   :  { %v893_v38 = vpop.eup %892 }
 0x403   :  { %v895_v41 = vpop.eup %894 }
 0x436   :  { %v776_v13 = vpop.f32.mrb[4].mxu1 }
 0x437   :  { %v522_v15 = vpop.f32.mrb[5].mxu1  ;;  %v563_v0 = vmul.f32 %v881_v14, %v776_v13 }
 0x438   :  { %v777_v17 = vpop.f32.mrb[6].mxu1  ;;  %v561_v43 = vmul.f32 %v893_v38, %v522_v15 }
 0x439   :  { %v564_v18 = vmul.f32 %v883_v16, %v777_v17  ;;  %v525_v19 = vpop.f32.mrb[7].mxu1 }
 0x43a   :  { %v562_v44 = vmul.f32 %v895_v41, %v525_v19 }
 0x43b   :  { %v843_v20 = vpack.i.bf16 %v564_v18, %v563_v0 }
 0x43d   :  { %844 = vrot.lane.b32.xlu1 %v843_v20, %s1062_s12 }
 0x43e   :  { %v780_v22 = vpop.f32.mrb[8].mxu1 }
 0x43f   :  { %v538_v24 = vpop.f32.mrb[9].mxu1  ;;  %v567_v29 = vmul.f32 %v887_v23, %v780_v22 }
 0x440   :  { %v781_v26 = vpop.f32.mrb[10].mxu1  ;;  %v565_v32 = vmul.f32 %v885_v21, %v538_v24 }
 0x441   :  { %v568_v30 = vmul.f32 %v889_v25, %v781_v26  ;;  %v541_v31 = vpop.f32.mrb[11].mxu1 }
 0x442   :  { %v566_v33 = vmul.f32 %v891_v27, %v541_v31 }
 0x443   :  { %v853_v34 = vpack.i.bf16 %v568_v30, %v567_v29 }
 0x444   :  { %v848_v35 = vpack.i.bf16 %v566_v33, %v565_v32 }
 0x445   :  { %854 = vrot.lane.b32.xlu1 %v853_v34, %s1076_s8 }
 0x446   :  { %849 = vrot.lane.b32.xlu0 %v848_v35, %s1077_s9 }
 0x4af   :  { %v845_v28 = vpop.permute.xlu1 %844 }
 0x4b0   :  { %v847_v39 = vunpack.i.h.bf16 %v845_v28  ;;  %v846_v40 = vunpack.i.l.bf16 %v845_v28 }
 0x4b2   :  { %v593_v48 = vsel %vm293_vm2, %v561_v43, %v846_v40  ;;  %v594_v49 = vsel %vm293_vm2, %v562_v44, %v847_v39 }
 0x4b7   :  { %v855_v42 = vpop.permute.xlu1 %854 }
 0x4b8   :  { %v850_v45 = vpop.permute.xlu0 %849  ;;  %v857_v50 = vunpack.i.h.bf16 %v855_v42  ;;  %v856_v51 = vunpack.i.l.bf16 %v855_v42 }
 0x4b9   :  { %v852_v46 = vunpack.i.h.bf16 %v850_v45  ;;  %v851_v47 = vunpack.i.l.bf16 %v850_v45 }
 0x4bb   :  { %v597_v52 = vsel %vm595_vm4, %v594_v49, %v852_v46  ;;  %v596_v53 = vsel %vm595_vm4, %v593_v48, %v851_v47 }
 0x4bc   :  { %v600_v54 = vsel %vm598_vm5, %v597_v52, %v857_v50  ;;  %v599_v55 = vsel %vm598_vm5, %v596_v53, %v856_v51 }
 0x4bd   :  { %v601_v56 = vpack.c.bf16 %v600_v54, %v599_v55 }
 0x4bf   :  { %787 = vmatmul.mubr.msk.bf16.vlgmr.msra.gmra.mrb[12].mxu1 %vm132_vm1, %v601_v56 }
 0x592   :  { %v662_v58 = vpop.f32.mrb[12].mxu1 }
 0x593   :  { %v663_v59 = vadd.f32 %v705_v57, %v662_v58  ;;  %v788_v60 = vpop.f32.mrb[13].mxu1 }
 0x594   :  { %v665_v61 = vpop.f32.mrb[14].mxu1 }
 0x595   :  { %669 = vst.msk [vmem:[#allocation13] sm:$0xff] %vm132_vm1, %v663_v59  ;;  %v666_v62 = vadd.f32 %v705_v57, %v665_v61  ;;  %v789_v63 = vpop.f32.mrb[15].mxu1 }
 0x597   :  { %670 = vst.msk [vmem:[#allocation13 + $0x8] sm:$0xff] %vm132_vm1, %v666_v62 }
 0x598   :  { %1039 = shalt.err (!%p1036_p10)
}
 0x599   :  { %s1040_s16 = scalar_lea.hbm %s1300_s7, 256 }
 0x59a   :  { %p1041_p11 = scmp.ne.s32.totalorder %s1300_s7, %s1040_s16  ;;  %p1044_p12 = scmp.lt.u32.totalorder %s1040_s16, %s1300_s7 }
 0x59c   :  { %p1046_p13 = pnand %p1044_p12, %p1041_p11 }
 0x59e   :  { %1049 = shalt.err (!%p1046_p13)
}
 0x59f   :  { %682 = dma.vmem_to_hbm [thread:$0]  %s677_s15, 256, %s1300_s7, [#allocation4], %s1061_s11, %s1061_s11, %s1062_s12  }
 0x5a0   :  { %1058 = dma.done.wait [#allocation4], 256  }
 0x5a1   :  { %1059 = vsyncadd [#allocation4], 4294967040 }
 0x5a2   :  { %686 = vsyncpa [#allocation3], 1 }
 0x5a3   :  { %687 = vsyncpa [#allocation6], 1 }
 0x5a4   :  { %688 = vsyncpa [#allocation9], 1 }
 0x5a5   :  { %689 = vsyncpa [#allocation12], 1 }
 0x5a6   :  { %690 = vsyncpa [#allocation4], 1 }

</bundles_post_ra>
